<compile_context>
chip_gen: v5e
topology: v5e:2x2
jax: 0.10.0
libtpu: 0.0.40
codegen_flags: <defaults>
</compile_context>

<pallas_src>
import jax
import jax.numpy as jnp
from jax.experimental import pallas as pl
from jax.experimental.pallas import tpu as pltpu


def _se_conv1x1_kernel(wg_ref, x_ref, o_ref):
    # wg_ref: (C_out, C_in)  gated weight  W * sigmoid(gate[n])  (f32)
    # x_ref:  (C_in, TM)     spatial tile (channels on sublanes, spatial on lanes)
    # o_ref:  (C_out, TM)    lane-dense output tile
    #
    # Single MXU matmul per tile; default precision with f32 operands keeps the
    # 1e-4 tolerance at K=240 (verified on-device by the asserts below).
    o_ref[...] = jnp.dot(
        wg_ref[...], x_ref[...].astype(jnp.float32),
        preferred_element_type=jnp.float32,
    ).astype(o_ref.dtype)


def _choose_tile(hw, n, *, max_tile=8192, min_spatial_blocks=1):
    """Pick the spatial tile width TM (the lane dimension of every tile).

    Block shapes must have their last dim be a multiple of 128 or equal the
    full array dim, so a single full-extent block is always legal.  When more
    than one block is needed (hw > max_tile, or caller asked for extra spatial
    blocks to feed both v7x TensorCores), pick the 128-multiple TM that
    minimizes ragged-tile waste plus a small per-step-overhead term.
    """
    want_blocks = max(min_spatial_blocks, -(-hw // max_tile))
    if want_blocks <= 1:
        return hw                                   # one full-extent block

    cap = min(max_tile, hw)
    best_tm, best_cost = None, None
    for tm in range((cap // 128) * 128, 0, -128):   # multiples of 128, big first
        steps = -(-hw // tm)
        if steps < want_blocks:
            continue
        waste = steps * tm - hw                     # padded lanes DMA'd for nothing
        cost = waste + 384 * steps                  # ~0.35us/step ~ a few hundred lanes
        if best_cost is None or cost < best_cost:
            best_cost, best_tm = cost, tm
    if best_tm is None:                             # hw < 128: single block
        return hw
    return best_tm


def se_mul_conv1x1(x_nchw, gate_nchw, weight_oihw, *,
                   max_tile=8192, min_spatial_blocks=1):
    """conv1x1(x * sigmoid(gate)) with PyTorch NCHW conventions (bias=False)."""
    N, C, H, W = x_nchw.shape
    Cout, Cin, kh, kw = weight_oihw.shape
    assert (Cin, kh, kw) == (C, 1, 1)
    assert gate_nchw.shape == (N, C, 1, 1)

    HW = H * W
    x3d = x_nchw.reshape(N, C, HW)                 # free reshape (NCHW is (N, C, HW))
    w2d = weight_oihw.reshape(Cout, Cin).astype(jnp.float32)

    # Fold the SE gate into the weight once in the wrapper (essentially free),
    # instead of an in-kernel scratch + pl.when(j == 0) init.  This is what
    # makes both grid axes safe to mark "parallel".
    g = jax.nn.sigmoid(gate_nchw.reshape(N, 1, C).astype(jnp.float32))
    wg = w2d[None, :, :] * g                       # (N, Cout, Cin) f32

    TM = _choose_tile(HW, N, max_tile=max_tile,
                      min_spatial_blocks=min_spatial_blocks)
    # cdiv grid: Pallas masks the stores of a ragged last tile; every output
    # column depends only on the same input column, so padded input columns
    # never contaminate valid outputs.
    grid = (N, pl.cdiv(HW, TM))

    # VMEM budget: double-buffered f32 x tile + out tile + gated weight, plus
    # the f32 copy the astype materializes when x is bf16, plus slack.
    vmem_needed = 2 * 4 * TM * (Cin + Cout) + 2 * 4 * Cout * Cin + 4 * TM * Cin
    vmem_limit = int(min(max(vmem_needed + (4 << 20), 32 << 20), 64 << 20))

    out3d = pl.pallas_call(
        _se_conv1x1_kernel,
        out_shape=jax.ShapeDtypeStruct((N, Cout, HW), x_nchw.dtype),
        grid_spec=pltpu.PrefetchScalarGridSpec(
            num_scalar_prefetch=0,
            grid=grid,
            in_specs=[
                pl.BlockSpec((None, Cout, Cin), lambda n, j: (n, 0, 0)),  # Wg[n]
                pl.BlockSpec((None, C, TM), lambda n, j: (n, 0, j)),      # x tile
            ],
            out_specs=pl.BlockSpec((None, Cout, TM), lambda n, j: (n, 0, j)),
        ),
        compiler_params=pltpu.CompilerParams(
            dimension_semantics=("parallel", "parallel"),   # megacore-safe now
            vmem_limit_bytes=vmem_limit,
        ),
    )(wg, x3d)

    return out3d.reshape(N, Cout, H, W)            # free reshape back to NCHW


def _reference(x, gate, weight):
    gated = x * jax.nn.sigmoid(gate)
    return jnp.einsum("nchw,oc->nohw", gated,
                      weight.reshape(weight.shape[0], -1))


if __name__ == "__main__":
    key = jax.random.PRNGKey(0)
    k1, k2, k3 = jax.random.split(key, 3)

    C_in, C_out = 240, 40   # fixed by the module's conv2d37

    weight = jax.random.normal(k3, (C_out, C_in, 1, 1), dtype=jnp.float32)
    weight = weight * (1.0 / jnp.sqrt(C_in))

    # --- Check 1: N=2, single full-extent spatial block (grid (2, 1)) -------
    N, H, W = 2, 16, 16
    x = jax.random.normal(k1, (N, C_in, H, W), dtype=jnp.float32)
    gate = jax.random.normal(k2, (N, C_in, 1, 1), dtype=jnp.float32)
    out = jax.block_until_ready(se_mul_conv1x1(x, gate, weight))
    ref = _reference(x, gate, weight)
    assert out.shape == (N, C_out, H, W)
    assert jnp.allclose(out, ref, atol=1e-4, rtol=1e-4), "mismatch (N=2, single block)"

    # --- Check 2: ragged spatial tiling (HW=400, TM=128 -> grid (1, 4)) -----
    H2, W2 = 20, 20
    x2 = jax.random.normal(k1, (1, C_in, H2, W2), dtype=jnp.float32)
    g2 = jax.random.normal(k2, (1, C_in, 1, 1), dtype=jnp.float32)
    out2 = jax.block_until_ready(se_mul_conv1x1(x2, g2, weight, max_tile=128))
    assert jnp.allclose(out2, _reference(x2, g2, weight),
                        atol=1e-4, rtol=1e-4), "mismatch (ragged tiles)"

    # --- Check 3: N=1 forced 2-way spatial split (v7x megacore path) --------
    out3 = jax.block_until_ready(
        se_mul_conv1x1(x2, g2, weight, min_spatial_blocks=2))
    assert jnp.allclose(out3, _reference(x2, g2, weight),
                        atol=1e-4, rtol=1e-4), "mismatch (2-way spatial split)"

    # --- Check 4: bf16 activations (halved HBM read), f32 matmul/accum ------
    xb = x2.astype(jnp.bfloat16)
    out4 = jax.block_until_ready(se_mul_conv1x1(xb, g2, weight))
    ref4 = _reference(xb.astype(jnp.float32), g2, weight)
    assert out4.dtype == jnp.bfloat16
    assert jnp.allclose(out4.astype(jnp.float32), ref4,
                        atol=2e-2, rtol=2e-2), "mismatch (bf16 activations)"

    print("KERNEL_OK")
</pallas_src>

<mosaic_0001>
module attributes {stable_mosaic.version = 11 : i64} {
  func.func @_se_conv1x1_kernel(%arg0: i32, %arg1: i32, %arg2: memref<1x40x240xf32, #tpu.memory_space<vmem>>, %arg3: memref<1x240x256xf32, #tpu.memory_space<vmem>>, %arg4: memref<1x40x256xf32, #tpu.memory_space<vmem>>) attributes {dimension_semantics = [#tpu.dimension_semantics<parallel>, #tpu.dimension_semantics<parallel>], iteration_bounds = array<i64: 2, 1>, scalar_prefetch = 0 : i64, scratch_operands = 0 : i64, tpu.core_type = #tpu.core_type<tc>, window_params = [{transform_indices = @transform_0, window_bounds = array<i64: 1, 40, 240>}, {transform_indices = @transform_1, window_bounds = array<i64: 1, 240, 256>}, {transform_indices = @transform_2, window_bounds = array<i64: 1, 40, 256>}]} {
    %c0 = arith.constant 0 : index
    %c0_0 = arith.constant 0 : index
    %c0_1 = arith.constant 0 : index
    %0 = vector.load %arg2[%c0, %c0_0, %c0_1] : memref<1x40x240xf32, #tpu.memory_space<vmem>>, vector<1x40x240xf32>
    %1 = vector.shape_cast %0 : vector<1x40x240xf32> to vector<40x240xf32>
    %c0_2 = arith.constant 0 : index
    %c0_3 = arith.constant 0 : index
    %c0_4 = arith.constant 0 : index
    %2 = vector.load %arg3[%c0_2, %c0_3, %c0_4] : memref<1x240x256xf32, #tpu.memory_space<vmem>>, vector<1x240x256xf32>
    %3 = vector.shape_cast %2 : vector<1x240x256xf32> to vector<240x256xf32>
    %cst = arith.constant dense<0.000000e+00> : vector<40x256xf32>
    %4 = tpu.matmul %1, %3, %cst {dimension_numbers = #tpu.dot_dimension_numbers<[1], [0], [0], [1], [0, 0, 1, 1], [], []>} : vector<40x240xf32>, vector<240x256xf32>, vector<40x256xf32> -> vector<40x256xf32>
    %c0_5 = arith.constant 0 : index
    %c0_6 = arith.constant 0 : index
    %c0_7 = arith.constant 0 : index
    %5 = vector.load %arg4[%c0_5, %c0_6, %c0_7] : memref<1x40x256xf32, #tpu.memory_space<vmem>>, vector<1x40x256xf32>
    %6 = vector.shape_cast %5 : vector<1x40x256xf32> to vector<40x256xf32>
    %7 = vector.shape_cast %4 : vector<40x256xf32> to vector<1x40x256xf32>
    tpu.vector_store %arg4[%c0_5, %c0_6, %c0_7], %7 {strides = array<i32>} : memref<1x40x256xf32, #tpu.memory_space<vmem>>, vector<1x40x256xf32>,
    return
  }
  func.func @transform_0(%arg0: i32, %arg1: i32) -> (i32, i32, i32) {
    %c0_i32 = arith.constant 0 : i32
    %c0_i32_0 = arith.constant 0 : i32
    %c0_i32_1 = arith.constant 0 : i32
    return %arg0, %c0_i32, %c0_i32_0 : i32, i32, i32
  }
  func.func @transform_1(%arg0: i32, %arg1: i32) -> (i32, i32, i32) {
    %c0_i32 = arith.constant 0 : i32
    %c0_i32_0 = arith.constant 0 : i32
    return %arg0, %c0_i32, %arg1 : i32, i32, i32
  }
  func.func @transform_2(%arg0: i32, %arg1: i32) -> (i32, i32, i32) {
    %c0_i32 = arith.constant 0 : i32
    %c0_i32_0 = arith.constant 0 : i32
    return %arg0, %c0_i32, %arg1 : i32, i32, i32
  }
}

</mosaic_0001>

<bundles_post_ra>
// kernel: tpu_custom_call.1
= control target key start
LH: loop header
LB: loop body
LE: loop exit
PB: predicated region body
PF: predicated region fallthrough
CT: control target
= control target key end

     0   :  { %7 = vsyncpa [#allocation3], 0  ;;  %s1088_s0 = inlined_call_operand.hbm [shape: f32[2,40,240], index: 0, kind: input, shape index: {}]   ;;  %s1089_s1 = inlined_call_operand.hbm [shape: f32[2,240,256], index: 1, kind: input, shape index: {}]   ;;  %s1090_s2 = inlined_call_operand.hbm [shape: f32[2,40,256], index: 2, kind: output, shape index: {}]  }
   0x1   :  { %9 = vsyncpa [#allocation3 + $0x1], 0 }
   0x2   :  { %10 = vsyncpa [#allocation6], 0 }
   0x3   :  { %12 = vsyncpa [#allocation6 + $0x1], 0 }
   0x4   :  { %13 = vsyncpa [#allocation4], 0 }
   0x5   :  { %15 = vsyncpa [#allocation4 + $0x1], 0  ;;  %s843_s9 = smov 0   ;;  %s845_s10 = smov 0  }
   0x6   :  { %s847_s11 = smov 0   ;;  %s849_s12 = smov 0  }
   0x7   :  { %s851_s13 = smov 0   ;;  %s853_s14 = smov 0  }
   0x8 LB: > { %s578_s15 = sadd.s32 4294967295, %s822_s14   ;;  %s579_s16 = sadd.s32 4294967294, %s822_s14   ;;  %s822_s14 = sphi %s853_s14, %s21_s14   ;;  %s818_s13 = sphi %s851_s13, %s1100_s13   ;;  %s814_s12 = sphi %s849_s12, %s1099_s12   ;;  %s810_s11 = sphi %s847_s11, %s1098_s11   ;;  %s806_s10 = sphi %s845_s10, %s1097_s10   ;;  %s802_s9 = sphi %s843_s9, %s1096_s9  }
   0x9   : > { %s33_s17 = sadd.s32 1, %s818_s13  ;;  %s40_s18 = sadd.s32 1, %s810_s11 }
   0xa   : > { %p35_p0 = scmp.ge.s32.totalorder %s33_s17, 2  ;;  %p47_p1 = scmp.ne.s32.totalorder %s810_s11, %s806_s10 }
   0xb   : > { %p48_p2 = scmp.eq.s32.totalorder %s822_s14, 0  ;;  %p53_p3 = scmp.ne.s32.totalorder %s806_s10, %s802_s9 }
   0xc   : > { %s1102_s17 = smov (%p35_p0, %s33_s17), 0  ;;  %p54_p5 = scmp.eq.s32.totalorder %s578_s15, 0 }
   0xd   : > { %p884_p4 = por %p48_p2, %p47_p1  ;;  %s37_s20 = ssub.s32 %s818_s13, %s1102_s17 }
   0xe   : > { %p107_p6 = scmp.eq.s32.totalorder %s578_s15, 1  ;;  %p38_p7 = scmp.eq.s32.totalorder %s37_s20, 0 }
   0xf   : > { %p890_p8 = por %p54_p5, %p53_p3  ;;  %p113_p10 = scmp.eq.s32.totalorder %s579_s16, 1 }
  0x10   : > { %p894_p9 = por %p107_p6, %p47_p1  ;;  %p581_p12 = scmp.ge.s32.totalorder %s822_s14, 2 }
  0x11   : > { %s899_s23 = scalar_select %p38_p7, %s810_s11, %s40_s18  }
  0x12   : > { %p901_p11 = por %p113_p10, %p53_p3  ;;  %p622_p13 = scmp.lt.s32.totalorder %s822_s14, 2 }
  0x13   : > { %s908_s25 = sand.u32 1, %s810_s11   ;;  %s599_s27 = smul.u32 80, %s818_s13 }
  0x14   : > { %s598_s26 = smul.u32 80, %s908_s25  ;;  %p914_p0 = pnand %p622_p13, %p884_p4 }
  0x15   : > { %s142_s3 = scalar_lea.hbm %s1088_s0, %s599_s27  ;;  %p584_p1 = scmp.ge.s32.totalorder %s822_s14, 1 }
  0x16   : > { %s137_s4 = scalar_lea.vmem [#allocation2], %s598_s26  ;;  %s143_s6 = sshll.u32 %s142_s3, 4  ;;  %s144_s6 = int_to_ptr.hbm [resolvable:$true] %s143_s6 }
  0x17   : > { %s145_s5 = sshll.u32 %s137_s4, 4  ;;  %s134_s7 = scalar_lea.sflag [#allocation3], %s908_s25  ;;  %s146_s5 = int_to_ptr.vmem [resolvable:$true] %s145_s5 }
  0x18   : > { %s824_s8 = smov 256   ;;  %s825_s15 = smov 16  }
  0x19   : > { %614 = dma.hbm_to_vmem [thread:$0]  (!%p914_p0), %s144_s6, 1280, %s146_s5, %s134_s7, %s824_s8, %s824_s8, %s825_s15  }
  0x1a   : > { %p177_p2 = scmp.lt.s32.totalorder %s822_s14, 3  ;;  %s600_s16 = smul.u32 480, %s908_s25 }
  0x1b   : > { %s601_s18 = smul.u32 480, %s818_s13  ;;  %s156_s3 = scalar_lea.sflag [#allocation6], %s908_s25 }
  0x1c   : > { %p178_p3 = pnand %p584_p1, %p177_p2  ;;  %s159_s27 = scalar_lea.vmem [#allocation5], %s600_s16 }
  0x1d   : > { %s166_s26 = scalar_lea.hbm %s1089_s1, %s601_s18  ;;  %s169_s29 = sshll.u32 %s159_s27, 4  ;;  %s170_s29 = int_to_ptr.vmem [resolvable:$true] %s169_s29 }
  0x1e   : > { %s167_s30 = sshll.u32 %s166_s26, 4  ;;  %181 = sbr.rel (%p178_p3) target bundleno = 243 (0xf3), region = 28  ;;  %s168_s30 = int_to_ptr.hbm [resolvable:$true] %s167_s30 }
  0x1f   : > { %617 = dma.hbm_to_vmem [thread:$0]  (!%p914_p0), %s168_s30, 7680, %s170_s29, %s156_s3, %s824_s8, %s824_s8, %s825_s15  }
  0x20   : > { %s935_s4 = sand.u32 (!%p178_p3), 1, %s806_s10  }
  0x21   : > { %s602_s5 = smul.u32 (!%p178_p3), 80, %s935_s4  ;;  %s184_s6 = scalar_lea.sflag (!%p178_p3), [#allocation3], %s935_s4 }
  0x23   : > { %s941_s7 = scalar_lea.vmem [#allocation2], %s602_s5 }
  0x24   : > { %789 = dma.done.wait (%p890_p8), %s184_s6, 1280  }
  0x25   : > { %791 = vsyncadd (%p890_p8), %s184_s6, 4294966016  ;;  %s603_s25 = smul.u32 480, %s935_s4  ;;  %s194_s28 = scalar_lea.sflag [#allocation6], %s935_s4 }
  0x27   : > { %s949_s8 = scalar_lea.vmem [#allocation5], %s603_s25 }
  0x28   : > { %793 = dma.done.wait (%p890_p8), %s194_s28, 7680  }
  0x29   : > { %795 = vsyncadd (%p890_p8), %s194_s28, 4294959616  ;;  %v267_v0 = vld [vmem:[%s949_s8 + $0xf8] sm:$0xff]  ;;  %v265_v1 = vld [vmem:[%s949_s8 + $0xe8] sm:$0xff]  ;;  %vm296_vm0 = vcmask 916480   ;;  %s1037_s21 = scalar_lea.vmem [#allocation7], %s602_s5  ;;  %s604_s15 = smul.u32 80, %s814_s12 }
  0x2a   : > { %376 = vmatpush.msra.mxu2 %v267_v0  ;;  %v295_v2 = vld [vmem:[%s949_s8 + $0x1d8] sm:$0xff]  ;;  %v266_v3 = vld [vmem:[%s949_s8 + $0xf0] sm:$0xff]  ;;  %v293_v5 = vld [vmem:[%s949_s8 + $0x1c8] sm:$0xff]  ;;  %s465_s20 = sshll.u32 %s1037_s21, 4  ;;  %s451_s12 = scalar_lea.sflag [#allocation4], %s935_s4  ;;  %s466_s20 = int_to_ptr.vmem [resolvable:$true] %s465_s20 }
  0x2b   : > { %v263_v4 = vld [vmem:[%s949_s8 + $0xd8] sm:$0xff]  ;;  %410 = vmatpush.msra.mxu3 %v295_v2  ;;  %312 = vmatpush.msra.mxu0 %v266_v3  ;;  %v264_v6 = vld [vmem:[%s949_s8 + $0xe0] sm:$0xff]  ;;  %v262_v8 = vld [vmem:[%s949_s8 + $0xd0] sm:$0xff]  ;;  %s464_s19 = scalar_lea.hbm %s1090_s2, %s604_s15  ;;  %s756_s5 = scalar_lea.hbm %s1090_s2, 160 }
  0x2c   : > { %377 = vmatpush.msra.mxu2 %v265_v1  ;;  %v291_v7 = vld [vmem:[%s949_s8 + $0x1b8] sm:$0xff]  ;;  %v294_v9 = vld [vmem:[%s949_s8 + $0x1d0] sm:$0xff]  ;;  %v261_v10 = vld [vmem:[%s949_s8 + $0xc8] sm:$0xff]  ;;  %s467_s26 = sshll.u32 %s464_s19, 4  ;;  %s468_s26 = int_to_ptr.hbm [resolvable:$true] %s467_s26 }
  0x2d   : > { %411 = vmatpush.msra.mxu3 %v293_v5  ;;  %313 = vmatpush.msra.mxu0 %v264_v6  ;;  %v289_v11 = vld [vmem:[%s949_s8 + $0x1a8] sm:$0xff]  ;;  %v260_v12 = vld [vmem:[%s949_s8 + $0xc0] sm:$0xff]  ;;  %v259_v14 = vld [vmem:[%s949_s8 + $0xb8] sm:$0xff]  ;;  %s750_s27 = sshra.s32 %s468_s26, 4  ;;  %s751_s27 = int_to_ptr.hbm [resolvable:$true] %s750_s27 }
  0x2e   : > { %378 = vmatpush.msra.mxu2 %v263_v4  ;;  %346 = vmatpush.msra.mxu1 %v294_v9  ;;  %v292_v13 = vld [vmem:[%s949_s8 + $0x1c0] sm:$0xff]  ;;  %v290_v15 = vld [vmem:[%s949_s8 + $0x1b0] sm:$0xff]  ;;  %v287_v16 = vld [vmem:[%s949_s8 + $0x198] sm:$0xff]  ;;  %s752_s29 = scalar_lea.hbm %s751_s27, 80  ;;  %p757_p7 = scmp.lt.s32.totalorder %s751_s27, %s1090_s2 }
  0x2f   : > { %412 = vmatpush.msra.mxu3 %v291_v7  ;;  %314 = vmatpush.msra.mxu0 %v262_v8  ;;  %v258_v17 = vld [vmem:[%s949_s8 + $0xb0] sm:$0xff]  ;;  %v257_v18 = vld [vmem:[%s949_s8 + $0xa8] sm:$0xff]  ;;  %v288_v19 = vld [vmem:[%s949_s8 + $0x1a0] sm:$0xff]  ;;  %p753_p4 = scmp.ne.s32.totalorder %s751_s27, %s752_s29  ;;  %p758_p8 = scmp.lt.s32.totalorder %s756_s5, %s752_s29 }
  0x30   : > { %379 = vmatpush.msra.mxu2 %v261_v10  ;;  %347 = vmatpush.msra.mxu1 %v292_v13  ;;  %v285_v20 = vld [vmem:[%s949_s8 + $0x188] sm:$0xff]  ;;  %v256_v21 = vld [vmem:[%s949_s8 + $0xa0] sm:$0xff]  ;;  %v255_v22 = vld [vmem:[%s949_s8 + $0x98] sm:$0xff] }
  0x31   : > { %413 = vmatpush.msra.mxu3 %v289_v11  ;;  %315 = vmatpush.msra.mxu0 %v260_v12  ;;  %v286_v23 = vld [vmem:[%s949_s8 + $0x190] sm:$0xff]  ;;  %v283_v24 = vld [vmem:[%s949_s8 + $0x178] sm:$0xff]  ;;  %v253_v26 = vld [vmem:[%s949_s8 + $0x88] sm:$0xff]  ;;  %p754_p5 = pnand %p753_p4, %p894_p9  ;;  %p759_p10 = por %p758_p8, %p757_p7 }
  0x32   : > { %380 = vmatpush.msra.mxu2 %v259_v14  ;;  %348 = vmatpush.msra.mxu1 %v290_v15  ;;  %v254_v25 = vld [vmem:[%s949_s8 + $0x90] sm:$0xff]  ;;  %v284_v27 = vld [vmem:[%s949_s8 + $0x180] sm:$0xff]  ;;  %v281_v28 = vld [vmem:[%s949_s8 + $0x168] sm:$0xff] }
  0x33   : > { %414 = vmatpush.msra.mxu3 %v287_v16  ;;  %316 = vmatpush.msra.mxu0 %v258_v17  ;;  %v252_v29 = vld [vmem:[%s949_s8 + $0x80] sm:$0xff]  ;;  %v251_v30 = vld [vmem:[%s949_s8 + $0x78] sm:$0xff]  ;;  %v282_v31 = vld [vmem:[%s949_s8 + $0x170] sm:$0xff]  ;;  %p755_p6 = pneg %p754_p5 }
  0x34   : > { %381 = vmatpush.msra.mxu2 %v257_v18  ;;  %349 = vmatpush.msra.mxu1 %v288_v19  ;;  %v279_v32 = vld [vmem:[%s949_s8 + $0x158] sm:$0xff]  ;;  %v250_v33 = vld [vmem:[%s949_s8 + $0x70] sm:$0xff]  ;;  %v249_v34 = vld [vmem:[%s949_s8 + $0x68] sm:$0xff] }
  0x35   : > { %415 = vmatpush.msra.mxu3 %v285_v20  ;;  %317 = vmatpush.msra.mxu0 %v256_v21  ;;  %v280_v35 = vld [vmem:[%s949_s8 + $0x160] sm:$0xff]  ;;  %v277_v36 = vld [vmem:[%s949_s8 + $0x148] sm:$0xff]  ;;  %v247_v38 = vld [vmem:[%s949_s8 + $0x58] sm:$0xff]  ;;  %p760_p13 = pnand %p759_p10, %p755_p6 }
  0x36   : > { %382 = vmatpush.msra.mxu2 %v255_v22  ;;  %350 = vmatpush.msra.mxu1 %v286_v23  ;;  %v248_v37 = vld [vmem:[%s949_s8 + $0x60] sm:$0xff]  ;;  %v278_v39 = vld [vmem:[%s949_s8 + $0x150] sm:$0xff]  ;;  %v275_v40 = vld [vmem:[%s949_s8 + $0x138] sm:$0xff] }
  0x37   : > { %416 = vmatpush.msra.mxu3 %v283_v24  ;;  %318 = vmatpush.msra.mxu0 %v254_v25  ;;  %v246_v41 = vld [vmem:[%s949_s8 + $0x50] sm:$0xff]  ;;  %v245_v42 = vld [vmem:[%s949_s8 + $0x48] sm:$0xff]  ;;  %v276_v43 = vld [vmem:[%s949_s8 + $0x140] sm:$0xff] }
  0x38   : > { %383 = vmatpush.msra.mxu2 %v253_v26  ;;  %351 = vmatpush.msra.mxu1 %v284_v27  ;;  %v273_v44 = vld [vmem:[%s949_s8 + $0x128] sm:$0xff]  ;;  %v244_v45 = vld [vmem:[%s949_s8 + $0x40] sm:$0xff]  ;;  %v243_v46 = vld [vmem:[%s949_s8 + $0x38] sm:$0xff] }
  0x39   : > { %417 = vmatpush.msra.mxu3 %v281_v28  ;;  %319 = vmatpush.msra.mxu0 %v252_v29  ;;  %v274_v47 = vld [vmem:[%s949_s8 + $0x130] sm:$0xff]  ;;  %v271_v48 = vld [vmem:[%s949_s8 + $0x118] sm:$0xff]  ;;  %v241_v50 = vld [vmem:[%s949_s8 + $0x28] sm:$0xff] }
  0x3a   : > { %384 = vmatpush.msra.mxu2 %v251_v30  ;;  %352 = vmatpush.msra.mxu1 %v282_v31  ;;  %v242_v49 = vld [vmem:[%s949_s8 + $0x30] sm:$0xff]  ;;  %v272_v51 = vld [vmem:[%s949_s8 + $0x120] sm:$0xff]  ;;  %v269_v52 = vld [vmem:[%s949_s8 + $0x108] sm:$0xff] }
  0x3b   : > { %418 = vmatpush.msra.mxu3 %v279_v32  ;;  %320 = vmatpush.msra.mxu0 %v250_v33  ;;  %v240_v53 = vld [vmem:[%s949_s8 + $0x20] sm:$0xff]  ;;  %v239_v54 = vld [vmem:[%s949_s8 + $0x18] sm:$0xff]  ;;  %v238_v56 = vld [vmem:[%s949_s8 + $0x10] sm:$0xff] }
  0x3c   : > { %385 = vmatpush.msra.mxu2 %v249_v34  ;;  %353 = vmatpush.msra.mxu1 %v280_v35  ;;  %v227_v55 = vld [vmem:[%s941_s7 + $0x8] sm:$0xff]  ;;  %v270_v57 = vld [vmem:[%s949_s8 + $0x110] sm:$0xff]  ;;  %v236_v60 = vld [vmem:[%s949_s8] sm:$0xff] }
  0x3d   : > { %419 = vmatpush.msra.mxu3 %v277_v36  ;;  %321 = vmatpush.msra.mxu0 %v248_v37  ;;  %v237_v58 = vld [vmem:[%s949_s8 + $0x8] sm:$0xff]  ;;  %v226_v59 = vld [vmem:[%s941_s7] sm:$0xff]  ;;  %v228_v63 = vld [vmem:[%s941_s7 + $0x10] sm:$0xff] }
  0x3e   : > { %386 = vmatpush.msra.mxu2 %v247_v38  ;;  %354 = vmatpush.msra.mxu1 %v278_v39  ;;  %v268_v61 = vld [vmem:[%s949_s8 + $0x100] sm:$0xff]  ;;  %v229_v62 = vld [vmem:[%s941_s7 + $0x18] sm:$0xff]  ;;  %v231_v0 = vld [vmem:[%s941_s7 + $0x28] sm:$0xff] }
  0x3f   : > { %420 = vmatpush.msra.mxu3 %v275_v40  ;;  %322 = vmatpush.msra.mxu0 %v246_v41  ;;  %v230_v1 = vld [vmem:[%s941_s7 + $0x20] sm:$0xff]  ;;  %v233_v2 = vld [vmem:[%s941_s7 + $0x38] sm:$0xff]  ;;  %v232_v3 = vld [vmem:[%s941_s7 + $0x30] sm:$0xff] }
  0x40   : > { %387 = vmatpush.msra.mxu2 %v245_v42  ;;  %355 = vmatpush.msra.mxu1 %v276_v43  ;;  %v235_v4 = vld [vmem:[%s941_s7 + $0x48] sm:$0xff]  ;;  %v234_v5 = vld [vmem:[%s941_s7 + $0x40] sm:$0xff] }
  0x41   : > { %421 = vmatpush.msra.mxu3 %v273_v44  ;;  %323 = vmatpush.msra.mxu0 %v244_v45 }
  0x42   : > { %388 = vmatpush.msra.mxu2 %v243_v46  ;;  %356 = vmatpush.msra.mxu1 %v274_v47 }
  0x43   : > { %422 = vmatpush.msra.mxu3 %v271_v48  ;;  %324 = vmatpush.msra.mxu0 %v242_v49 }
  0x44   : > { %389 = vmatpush.msra.mxu2 %v241_v50  ;;  %357 = vmatpush.msra.mxu1 %v272_v51 }
  0x45   : > { %423 = vmatpush.msra.mxu3 %v269_v52  ;;  %325 = vmatpush.msra.mxu0 %v240_v53 }
  0x46   : > { %390 = vmatpush.msra.mxu2 %v239_v54  ;;  %590 = vmatmul.msk.f32.vlgmr.msra.gmra.mxu3 %vm296_vm0, %v227_v55 }
  0x47   : > { %326 = vmatpush.msra.mxu0 %v238_v56  ;;  %358 = vmatpush.msra.mxu1 %v270_v57 }
  0x48   : > { %391 = vmatpush.msra.mxu2 %v237_v58 }
  0x49   : > { %392 = vmatmul.f32.vlgmr.msra.gmra.mxu2 %v226_v59  ;;  %327 = vmatpush.msra.mxu0 %v236_v60 }
  0x4a   : > { %359 = vmatpush.msra.mxu1 %v268_v61  ;;  %328 = vmatmul.f32.vlgmr.msra.gmra.mxu0 %v226_v59 }
  0x4b   : > { %585 = vmatmul.msk.f32.vlgmr.msra.gmra.mxu1 %vm296_vm0, %v227_v55 }
  0x4e   : > { %591 = vmatmul.msk.f32.gmra.mxu3 %vm296_vm0, %v229_v62 }
  0x51   : > { %395 = vmatmul.f32.gmra.mxu2 %v228_v63 }
  0x52   : > { %331 = vmatmul.f32.gmra.mxu0 %v228_v63 }
  0x53   : > { %586 = vmatmul.msk.f32.gmra.mxu1 %vm296_vm0, %v229_v62 }
  0x56   : > { %592 = vmatmul.msk.f32.gmra.mxu3 %vm296_vm0, %v231_v0 }
  0x59   : > { %398 = vmatmul.f32.gmra.mxu2 %v230_v1 }
  0x5a   : > { %334 = vmatmul.f32.gmra.mxu0 %v230_v1 }
  0x5b   : > { %587 = vmatmul.msk.f32.gmra.mxu1 %vm296_vm0, %v231_v0 }
  0x5e   : > { %593 = vmatmul.msk.f32.gmra.mxu3 %vm296_vm0, %v233_v2 }
  0x61   : > { %401 = vmatmul.f32.gmra.mxu2 %v232_v3 }
  0x62   : > { %337 = vmatmul.f32.gmra.mxu0 %v232_v3 }
  0x63   : > { %588 = vmatmul.msk.f32.gmra.mxu1 %vm296_vm0, %v233_v2 }
  0x66   : > { %594 = vmatmul.msk.f32.gmra.mxu3 %vm296_vm0, %v235_v4 }
  0x69   : > { %404 = vmatmul.f32.gmra.mxu2 %v234_v5 }
  0x6a   : > { %340 = vmatmul.f32.gmra.mxu0 %v234_v5 }
  0x6b   : > { %589 = vmatmul.msk.f32.gmra.mxu1 %vm296_vm0, %v235_v4 }
  0xc7   : > { %v329_v6 = vpop.f32.mrf.mxu0 }
  0xc8   : > { %v361_v7 = vpop.f32.mrf.mxu1 }
  0xc9   : > { %v362_v8 = vadd.f32 %v361_v7, %v329_v6  ;;  %v425_v9 = vpop.f32.mrf.mxu3 }
  0xcb   : > { %440 = vst [vmem:[%s1037_s21] sm:$0xff] %v362_v8 }
  0xcc   : > { %v393_v10 = vpop.f32.mrf.mxu2 }
  0xcd   : > { %v426_v11 = vadd.f32 %v425_v9, %v393_v10 }
  0xcf   : > { %441 = vst [vmem:[%s1037_s21 + $0x8] sm:$0xff] %v426_v11  ;;  %v332_v12 = vpop.f32.mrf.mxu0 }
  0xd0   : > { %v364_v13 = vpop.f32.mrf.mxu1 }
  0xd1   : > { %v365_v14 = vadd.f32 %v364_v13, %v332_v12  ;;  %v428_v15 = vpop.f32.mrf.mxu3 }
  0xd3   : > { %442 = vst [vmem:[%s1037_s21 + $0x10] sm:$0xff] %v365_v14 }
  0xd4   : > { %v396_v16 = vpop.f32.mrf.mxu2 }
  0xd5   : > { %v429_v17 = vadd.f32 %v428_v15, %v396_v16 }
  0xd7   : > { %443 = vst [vmem:[%s1037_s21 + $0x18] sm:$0xff] %v429_v17  ;;  %v335_v18 = vpop.f32.mrf.mxu0 }
  0xd8   : > { %v367_v19 = vpop.f32.mrf.mxu1 }
  0xd9   : > { %v368_v20 = vadd.f32 %v367_v19, %v335_v18  ;;  %v431_v21 = vpop.f32.mrf.mxu3 }
  0xdb   : > { %444 = vst [vmem:[%s1037_s21 + $0x20] sm:$0xff] %v368_v20 }
  0xdc   : > { %v399_v22 = vpop.f32.mrf.mxu2 }
  0xdd   : > { %v432_v23 = vadd.f32 %v431_v21, %v399_v22 }
  0xdf   : > { %445 = vst [vmem:[%s1037_s21 + $0x28] sm:$0xff] %v432_v23  ;;  %v338_v24 = vpop.f32.mrf.mxu0 }
  0xe0   : > { %v370_v25 = vpop.f32.mrf.mxu1 }
  0xe1   : > { %v371_v26 = vadd.f32 %v370_v25, %v338_v24  ;;  %v434_v27 = vpop.f32.mrf.mxu3 }
  0xe3   : > { %446 = vst [vmem:[%s1037_s21 + $0x30] sm:$0xff] %v371_v26 }
  0xe4   : > { %v402_v28 = vpop.f32.mrf.mxu2 }
  0xe5   : > { %v435_v29 = vadd.f32 %v434_v27, %v402_v28 }
  0xe7   : > { %447 = vst [vmem:[%s1037_s21 + $0x38] sm:$0xff] %v435_v29  ;;  %v341_v30 = vpop.f32.mrf.mxu0 }
  0xe8   : > { %v373_v31 = vpop.f32.mrf.mxu1 }
  0xe9   : > { %v374_v32 = vadd.f32 %v373_v31, %v341_v30  ;;  %v437_v33 = vpop.f32.mrf.mxu3 }
  0xeb   : > { %448 = vst [vmem:[%s1037_s21 + $0x40] sm:$0xff] %v374_v32 }
  0xec   : > { %v405_v34 = vpop.f32.mrf.mxu2 }
  0xed   : > { %v438_v35 = vadd.f32 %v437_v33, %v405_v34 }
  0xef   : > { %449 = vst [vmem:[%s1037_s21 + $0x48] sm:$0xff] %v438_v35 }
  0xf0   : > { %763 = shalt.err (!%p760_p13)
}
  0xf1   : > { %s826_s4 = smov 256   ;;  %s827_s25 = smov 16  }
  0xf2   : > { %609 = dma.vmem_to_hbm [thread:$0]  (%p894_p9), %s466_s20, 1280, %s468_s26, %s451_s12, %s826_s4, %s826_s4, %s827_s25  }
  0xf3 PF: > { %s482_s28 = sand.u32 1, %s802_s9   ;;  %p619_p0 = pnand %p581_p12, %p901_p11 }
  0xf4   : > { %s483_s8 = scalar_lea.sflag [#allocation4], %s482_s28 }
  0xf5   : > { %p620_p1 = pneg %p619_p0 }
  0xf7   : > { %797 = dma.done.wait (%p620_p1), %s483_s8, 1280  }
  0xf8   : > { %799 = vsyncadd (%p620_p1), %s483_s8, 4294966016  ;;  %s21_s14 = sadd.s32 1, %s822_s14   ;;  %s1096_s9 = smov %s806_s10 }
  0xf9   : > { %p18_p2 = scmp.ge.s32.totalorder %s21_s14, 4   ;;  %s1097_s10 = smov %s810_s11 }
  0xfa   : > { %s1098_s11 = smov %s899_s23  ;;  %s1099_s12 = smov %s818_s13 }
  0xfb   : > { %s1100_s13 = smov %s1102_s17  ;;  %20 = sbr.rel (!%p18_p2) target bundleno = 8 (0x8), region = 86 }
 0x100   :  { %489 = vsyncpa [#allocation3], 1 }
 0x101   :  { %491 = vsyncpa [#allocation3 + $0x1], 1 }
 0x102   :  { %492 = vsyncpa [#allocation6], 1 }
 0x103   :  { %494 = vsyncpa [#allocation6 + $0x1], 1 }
 0x104   :  { %495 = vsyncpa [#allocation4], 1 }
 0x105   :  { %497 = vsyncpa [#allocation4 + $0x1], 1 }

</bundles_post_ra>
